<compile_context>
chip_gen: v7x
topology: tpu7x:2x2x1
jax: 0.10.0
libtpu: 0.0.40
codegen_flags: <defaults>
</compile_context>

<pallas_src>
import functools

import jax
import jax.numpy as jnp
from jax.experimental import pallas as pl
from jax.experimental.pallas import tpu as pltpu

_NEG = -1e30                  # "minus infinity" that stays finite under subtraction
_LANES = 128                  # TPU lane width
_STATS_W = 128                # lane-replicated stats row width
_TILE_CAP = 1024              # larger tiles amortize the ~0.35us per-grid-step overhead
_FUSED_VMEM_BUDGET = 24 << 20 # keep fused path well under v7x's 32 MiB scoped VMEM


def _round_up(x, m):
    return (x + m - 1) // m * m


def _cdiv(a, b):
    return (a + b - 1) // b


def _tile_plan(n, cap=_TILE_CAP):
    """Balanced tiling: pick num_tiles first, then a 16-aligned tile_n."""
    num_tiles = max(1, _cdiv(n, cap))
    tile_n = _round_up(_cdiv(n, num_tiles), 16)   # 16: bf16 (16,128) sublane packing
    return tile_n, num_tiles, tile_n * num_tiles


def _buf_bytes(rows, cols, itemsize, nbuf=1):
    """VMEM bytes for one (rows, cols) buffer, padded to (8, 128) tiles."""
    return nbuf * _round_up(max(rows, 1), 8) * _round_up(max(cols, 1), _LANES) * itemsize


# ==========================================================================
# fused single-call path: grid = (phase, tile), cache resident in VMEM
# ==========================================================================
def _fused_kernel(xg_ref, w_ref, b_ref, wo_ref, bo_ref, out_ref,
                  cache_ref, m_sc, l_sc,
                  *, hidden, n_valid, tile_n, compute_dtype):
    phase = pl.program_id(0)
    j = pl.program_id(1)
    start = pl.multiple_of(j * tile_n, 16)
    rows = pl.ds(start, tile_n)
    cache_w = cache_ref.shape[-1]

    @pl.when(phase == 0)
    def _phase0():
        @pl.when(j == 0)
        def _init():
            m_sc[...] = jnp.full_like(m_sc, _NEG)
            l_sc[...] = jnp.zeros_like(l_sc)

        # One MXU matmul produces Q | K | V (f32 accumulation); 1/sqrt(H) is
        # folded into the Q weights/bias by the wrapper.
        qkv = jnp.dot(xg_ref[...], w_ref[...],
                      preferred_element_type=jnp.float32) + b_ref[...]
        q = qkv[:, :hidden]
        k = qkv[:, hidden:2 * hidden]
        v = qkv[:, 2 * hidden:3 * hidden]

        score = jnp.sum(q * k, axis=-1, keepdims=True)            # (tile_n, 1) f32
        row = j * tile_n + jax.lax.broadcasted_iota(jnp.int32, (tile_n, 1), 0)
        score = jnp.where(row < n_valid, score, jnp.float32(_NEG))

        # Direct sub-slice stores into the persistent VMEM cache (no concat temp).
        cache_ref[rows, :hidden] = v
        cache_ref[rows, hidden:] = jnp.broadcast_to(score, (tile_n, cache_w - hidden))

        # Flash-style online global max / sum (lane-replicated accumulators).
        m_old = m_sc[...]
        t_max = jnp.max(score, axis=0, keepdims=True)              # (1, 1)
        m_new = jnp.maximum(m_old, t_max)
        l_sc[...] = (l_sc[...] * jnp.exp(m_old - m_new)
                     + jnp.sum(jnp.exp(score - m_new[:, :1]), axis=0, keepdims=True))
        m_sc[...] = m_new

    @pl.when(phase == 1)
    def _phase1():
        m = m_sc[...][:, :1]                                       # (1, 1)
        inv_l = 1.0 / l_sc[...][:, :1]                             # (1, 1)

        c = cache_ref[rows, :]                                     # (tile_n, cache_w)
        v = c[:, :hidden]
        s = c[:, hidden:hidden + 1]

        w = jnp.exp(s - m) * inv_l                                 # softmax weight, f32
        attn = (w * v).astype(compute_dtype)
        out = jnp.dot(attn, wo_ref[...], preferred_element_type=jnp.float32)
        out_ref[...] = (out + bo_ref[...]).astype(out_ref.dtype)   # lane-dense store


# ==========================================================================
# fallback two-pass path (large N): both passes megacore-parallel
# ==========================================================================
def _p1_kernel(xg_ref, w_ref, b_ref, vc_ref, sc_ref, *, hidden, n_valid, tile_n):
    j = pl.program_id(0)
    qkv = jnp.dot(xg_ref[...], w_ref[...],
                  preferred_element_type=jnp.float32) + b_ref[...]
    q = qkv[:, :hidden]
    k = qkv[:, hidden:2 * hidden]
    v = qkv[:, 2 * hidden:3 * hidden]

    score = jnp.sum(q * k, axis=-1, keepdims=True)
    row = j * tile_n + jax.lax.broadcasted_iota(jnp.int32, (tile_n, 1), 0)
    sc_ref[...] = jnp.where(row < n_valid, score, jnp.float32(_NEG))
    vc_ref[...] = v.astype(vc_ref.dtype)


def _p2_kernel(vc_ref, sc_ref, stats_ref, wo_ref, bo_ref, out_ref, *, compute_dtype):
    st = stats_ref[...]
    m = st[:, :1]
    inv_l = st[:, _STATS_W // 2:_STATS_W // 2 + 1]

    w = jnp.exp(sc_ref[...] - m) * inv_l
    attn = (w * vc_ref[...].astype(jnp.float32)).astype(compute_dtype)
    out = jnp.dot(attn, wo_ref[...], preferred_element_type=jnp.float32)
    out_ref[...] = (out + bo_ref[...]).astype(out_ref.dtype)


# ==========================================================================
# wrapper
# ==========================================================================
def cross_attention_fusion(node_embed, graph_embed, params, batch=None, *,
                           compute_dtype=jnp.bfloat16, out_dtype=jnp.float32,
                           tile_n=None, force_two_pass=False):
    """Pallas equivalent of CrossAttentionFusionModule.forward."""
    # graph_embed[batch] broadcast (plain-JAX glue, same as the PyTorch code).
    if graph_embed.ndim == 2 and node_embed.shape[0] != graph_embed.shape[0]:
        assert batch is not None, "need `batch` to broadcast graph_embed"
        graph_embed = graph_embed[batch]

    n, node_dim = node_embed.shape
    graph_dim = graph_embed.shape[1]
    hidden = params["wq"].shape[1]
    out_dim = params["wo"].shape[1]

    if n == 0:                                    # empty-graph edge case
        return jnp.zeros((0, out_dim), out_dtype)

    if tile_n is None:
        tile_n, num_tiles, n_pad = _tile_plan(n)
    else:
        tile_n = _round_up(tile_n, 16)
        num_tiles = _cdiv(n, tile_n)
        n_pad = tile_n * num_tiles

    f_total = node_dim + graph_dim
    out_pad = _round_up(out_dim, _LANES)          # lane-dense output
    cache_w = _round_up(hidden + 1, _LANES)       # V + score, lane-dense

    itm = jnp.dtype(compute_dtype).itemsize
    otm = jnp.dtype(out_dtype).itemsize

    # ---------------- pack inputs / weights (tiny plain-JAX glue) ------------
    scale = jnp.float32(1.0 / (float(hidden) ** 0.5))

    xg = jnp.concatenate([node_embed.astype(jnp.float32),
                          graph_embed.astype(jnp.float32)], axis=-1)
    xg = jnp.pad(xg, ((0, n_pad - n), (0, 0))).astype(compute_dtype)

    # block-diagonal packed input weight: [x|g] @ W -> [Q | K | V]
    w_in = jnp.zeros((f_total, 3 * hidden), jnp.float32)
    w_in = w_in.at[:node_dim, :hidden].set(params["wq"].astype(jnp.float32) * scale)
    w_in = w_in.at[node_dim:, hidden:2 * hidden].set(params["wk"].astype(jnp.float32))
    w_in = w_in.at[node_dim:, 2 * hidden:].set(params["wv"].astype(jnp.float32))
    w_in = w_in.astype(compute_dtype)

    b_in = jnp.concatenate(
        [params["bq"].astype(jnp.float32).reshape(1, -1) * scale,
         params["bk"].astype(jnp.float32).reshape(1, -1),
         params["bv"].astype(jnp.float32).reshape(1, -1)], axis=-1)

    wo_pad = jnp.zeros((hidden, out_pad), jnp.float32)
    wo_pad = wo_pad.at[:, :out_dim].set(params["wo"].astype(jnp.float32))
    wo_pad = wo_pad.astype(compute_dtype)
    bo_pad = jnp.zeros((1, out_pad), jnp.float32)
    bo_pad = bo_pad.at[:, :out_dim].set(
        params["bo"].astype(jnp.float32).reshape(1, -1))

    # ---------------- fused single-call fast path -----------------------------
    fused_bytes = (_buf_bytes(n_pad, cache_w, 4)                 # VMEM-resident cache
                   + _buf_bytes(tile_n, f_total, itm, 2)         # xg, double buffered
                   + _buf_bytes(f_total, 3 * hidden, itm)
                   + _buf_bytes(1, 3 * hidden, 4)
                   + _buf_bytes(hidden, out_pad, itm)
                   + _buf_bytes(1, out_pad, 4)
                   + _buf_bytes(tile_n, out_pad, otm, 2)         # out, double buffered
                   + 2 * _buf_bytes(1, _STATS_W, 4))
    use_fused = (not force_two_pass) and (fused_bytes <= _FUSED_VMEM_BUDGET)

    if use_fused:
        vmem_limit = min(32 << 20, max(8 << 20, 2 * fused_bytes))
        last = num_tiles - 1
        out = pl.pallas_call(
            functools.partial(_fused_kernel, hidden=hidden, n_valid=n,
                              tile_n=tile_n, compute_dtype=compute_dtype),
            out_shape=jax.ShapeDtypeStruct((n_pad, out_pad), out_dtype),
            grid=(2, num_tiles),                                  # (phase, tile)
            in_specs=[
                # phase 1 keeps the last xg block resident -> no re-fetch
                pl.BlockSpec((tile_n, f_total),
                             lambda p, j: (j + p * (last - j), 0)),
                pl.BlockSpec((f_total, 3 * hidden), lambda p, j: (0, 0)),
                pl.BlockSpec((1, 3 * hidden), lambda p, j: (0, 0)),
                pl.BlockSpec((hidden, out_pad), lambda p, j: (0, 0)),
                pl.BlockSpec((1, out_pad), lambda p, j: (0, 0)),
            ],
            # phase 0 parks the output on block 0 (never written back there);
            # phase 1 walks the blocks once and writes each exactly once.
            out_specs=pl.BlockSpec((tile_n, out_pad), lambda p, j: (p * j, 0)),
            scratch_shapes=[pltpu.VMEM((n_pad, cache_w), jnp.float32),   # V | score
                            pltpu.VMEM((1, _STATS_W), jnp.float32),      # running max
                            pltpu.VMEM((1, _STATS_W), jnp.float32)],     # running sum
            compiler_params=pltpu.CompilerParams(
                dimension_semantics=("arbitrary", "arbitrary"),
                vmem_limit_bytes=vmem_limit),
            cost_estimate=pl.CostEstimate(
                flops=int(2 * n_pad * f_total * 3 * hidden
                          + 2 * n_pad * hidden * out_pad + 6 * n_pad * hidden),
                transcendentals=int(3 * n_pad),
                bytes_accessed=int(n_pad * f_total * itm
                                   + f_total * 3 * hidden * itm + 3 * hidden * 4
                                   + hidden * out_pad * itm + out_pad * 4
                                   + n_pad * out_pad * otm)),
        )(xg, w_in, b_in, wo_pad, bo_pad)
        return out[:n, :out_dim]

    # ---------------- fallback: two passes, both megacore-parallel ------------
    p1_bytes = (_buf_bytes(tile_n, f_total, itm, 2)
                + _buf_bytes(f_total, 3 * hidden, itm)
                + _buf_bytes(1, 3 * hidden, 4)
                + _buf_bytes(tile_n, hidden, itm, 2)
                + _buf_bytes(tile_n, 1, 4, 2))
    v_cache, s_cache = pl.pallas_call(
        functools.partial(_p1_kernel, hidden=hidden, n_valid=n, tile_n=tile_n),
        out_shape=(jax.ShapeDtypeStruct((n_pad, hidden), compute_dtype),  # V (narrow)
                   jax.ShapeDtypeStruct((n_pad, 1), jnp.float32)),        # score
        grid=(num_tiles,),
        in_specs=[pl.BlockSpec((tile_n, f_total), lambda i: (i, 0)),
                  pl.BlockSpec((f_total, 3 * hidden), lambda i: (0, 0)),
                  pl.BlockSpec((1, 3 * hidden), lambda i: (0, 0))],
        out_specs=(pl.BlockSpec((tile_n, hidden), lambda i: (i, 0)),
                   pl.BlockSpec((tile_n, 1), lambda i: (i, 0))),
        compiler_params=pltpu.CompilerParams(
            dimension_semantics=("parallel",),            # both TCs on v7x
            vmem_limit_bytes=min(32 << 20, max(8 << 20, 2 * p1_bytes))),
    )(xg, w_in, b_in)

    # Tiny global log-sum-exp over all nodes (plain JAX; padded rows are -1e30).
    m = jnp.max(s_cache)
    inv_l = 1.0 / jnp.sum(jnp.exp(s_cache - m))
    half = _STATS_W // 2
    stats = jnp.concatenate(
        [jnp.broadcast_to(jnp.reshape(m, (1, 1)), (1, half)),
         jnp.broadcast_to(jnp.reshape(inv_l, (1, 1)), (1, half))],
        axis=-1).astype(jnp.float32)

    p2_bytes = (_buf_bytes(tile_n, hidden, itm, 2)
                + _buf_bytes(tile_n, 1, 4, 2)
                + _buf_bytes(1, _STATS_W, 4)
                + _buf_bytes(hidden, out_pad, itm)
                + _buf_bytes(1, out_pad, 4)
                + _buf_bytes(tile_n, out_pad, otm, 2))
    out = pl.pallas_call(
        functools.partial(_p2_kernel, compute_dtype=compute_dtype),
        out_shape=jax.ShapeDtypeStruct((n_pad, out_pad), out_dtype),
        grid=(num_tiles,),
        in_specs=[pl.BlockSpec((tile_n, hidden), lambda i: (i, 0)),
                  pl.BlockSpec((tile_n, 1), lambda i: (i, 0)),
                  pl.BlockSpec((1, _STATS_W), lambda i: (0, 0)),
                  pl.BlockSpec((hidden, out_pad), lambda i: (0, 0)),
                  pl.BlockSpec((1, out_pad), lambda i: (0, 0))],
        out_specs=pl.BlockSpec((tile_n, out_pad), lambda i: (i, 0)),
        compiler_params=pltpu.CompilerParams(
            dimension_semantics=("parallel",),
            vmem_limit_bytes=min(32 << 20, max(8 << 20, 2 * p2_bytes))),
    )(v_cache, s_cache, stats, wo_pad, bo_pad)
    return out[:n, :out_dim]


# ==========================================================================
# init + pure-JAX reference
# ==========================================================================
def init_params(key, node_dim, graph_dim, out_dim, hidden_dim=64,
                dtype=jnp.float32):
    """Deterministic init matching nn.Linear shapes (uniform +-1/sqrt(fan_in))."""
    ks = jax.random.split(key, 8)

    def linear(kw, kb, fan_in, fan_out):
        bound = float(fan_in) ** -0.5
        w = jax.random.uniform(kw, (fan_in, fan_out), dtype, -bound, bound)
        b = jax.random.uniform(kb, (1, fan_out), dtype, -bound, bound)
        return w, b

    wq, bq = linear(ks[0], ks[1], node_dim, hidden_dim)
    wk, bk = linear(ks[2], ks[3], graph_dim, hidden_dim)
    wv, bv = linear(ks[4], ks[5], graph_dim, hidden_dim)
    wo, bo = linear(ks[6], ks[7], hidden_dim, out_dim)
    return dict(wq=wq, bq=bq, wk=wk, bk=bk, wv=wv, bv=bv, wo=wo, bo=bo)


def _reference(node_embed, graph_embed, params, batch=None):
    """Pure-JAX f32 reference (mirrors the PyTorch forward)."""
    if graph_embed.ndim == 2 and node_embed.shape[0] != graph_embed.shape[0]:
        graph_embed = graph_embed[batch]
    q = node_embed @ params["wq"] + params["bq"]
    k = graph_embed @ params["wk"] + params["bk"]
    v = graph_embed @ params["wv"] + params["bv"]
    score = jnp.sum(q * k, axis=-1, keepdims=True) / (q.shape[-1] ** 0.5)
    w = jax.nn.softmax(score, axis=0)
    return (w * v) @ params["wo"] + params["bo"]


if __name__ == "__main__":
    key = jax.random.PRNGKey(0)
    k_data, k_params = jax.random.split(key, 2)

    node_dim, graph_dim, hidden_dim, out_dim = 16, 32, 64, 8
    params = init_params(k_params, node_dim, graph_dim, out_dim, hidden_dim)

    checks = [
        # (N, B, compute_dtype, out_dtype, force_two_pass, atol)
        (8,   2, jnp.float32,  jnp.float32,  False, 1e-4),   # fused, exact dtype
        (8,   2, jnp.bfloat16, jnp.bfloat16, False, 3e-2),   # fused, bf16 MXU + bf16 out
        (650, 3, jnp.float32,  jnp.float32,  False, 1e-4),   # fused, multi-row padding
        (650, 3, jnp.float32,  jnp.float32,  True,  1e-4),   # two-pass fallback (parallel)
        (650, 3, jnp.bfloat16, jnp.float32,  True,  3e-2),   # two-pass fallback, bf16 cache
    ]
    for idx, (n, b, cdt, odt, two_pass, tol) in enumerate(checks):
        kn, kg, kb = jax.random.split(jax.random.fold_in(k_data, idx), 3)
        node_embed = jax.random.normal(kn, (n, node_dim), jnp.float32)
        graph_embed = jax.random.normal(kg, (b, graph_dim), jnp.float32)
        batch = jax.random.randint(kb, (n,), 0, b, jnp.int32)

        fused = cross_attention_fusion(node_embed, graph_embed, params, batch,
                                       compute_dtype=cdt, out_dtype=odt,
                                       force_two_pass=two_pass)
        fused = jax.block_until_ready(fused)

        ref = _reference(node_embed, graph_embed, params, batch)
        assert fused.shape == (n, out_dim)
        err = float(jnp.max(jnp.abs(fused.astype(jnp.float32) - ref)))
        assert err <= tol, f"case {idx}: max abs err {err} > {tol}"

    print("KERNEL_OK")
</pallas_src>

<mosaic_0001>
module attributes {stable_mosaic.version = 11 : i64} {
  func.func @_fused_kernel(%arg0: i32, %arg1: i32, %arg2: memref<16x48xf32, #tpu.memory_space<vmem>>, %arg3: memref<48x192xf32, #tpu.memory_space<vmem>>, %arg4: memref<1x192xf32, #tpu.memory_space<vmem>>, %arg5: memref<64x128xf32, #tpu.memory_space<vmem>>, %arg6: memref<1x128xf32, #tpu.memory_space<vmem>>, %arg7: memref<16x128xf32, #tpu.memory_space<vmem>>, %arg8: memref<16x128xf32, #tpu.memory_space<vmem>>, %arg9: memref<1x128xf32, #tpu.memory_space<vmem>>, %arg10: memref<1x128xf32, #tpu.memory_space<vmem>>) attributes {dimension_semantics = [#tpu.dimension_semantics<arbitrary>, #tpu.dimension_semantics<arbitrary>], iteration_bounds = array<i64: 2, 1>, scalar_prefetch = 0 : i64, scratch_operands = 3 : i64, tpu.core_type = #tpu.core_type<tc>, window_params = [{transform_indices = @transform_0, window_bounds = array<i64: 16, 48>}, {pipeline_mode = #tpu.pipeline_mode<synchronous>, transform_indices = @transform_1, window_bounds = array<i64: 48, 192>}, {pipeline_mode = #tpu.pipeline_mode<synchronous>, transform_indices = @transform_2, window_bounds = array<i64: 1, 192>}, {pipeline_mode = #tpu.pipeline_mode<synchronous>, transform_indices = @transform_3, window_bounds = array<i64: 64, 128>}, {pipeline_mode = #tpu.pipeline_mode<synchronous>, transform_indices = @transform_4, window_bounds = array<i64: 1, 128>}, {transform_indices = @transform_5, window_bounds = array<i64: 16, 128>}]} {
    %c16_i32 = arith.constant 16 : i32
    %0 = arith.muli %arg1, %c16_i32 : i32
    %1 = tpu.assume_multiple %0, 16 : i32
    %c0_i32 = arith.constant 0 : i32
    %2 = arith.cmpi eq, %arg0, %c0_i32 : i32
    %3 = arith.extui %2 : i1 to i32
    %c0_i32_0 = arith.constant 0 : i32
    %4 = arith.cmpi ne, %3, %c0_i32_0 : i32
    scf.if %4 {
      %c0_i32_2 = arith.constant 0 : i32
      %8 = arith.cmpi eq, %arg1, %c0_i32_2 : i32
      %9 = arith.extui %8 : i1 to i32
      %c0_i32_3 = arith.constant 0 : i32
      %10 = arith.cmpi ne, %9, %c0_i32_3 : i32
      scf.if %10 {
        %cst_23 = arith.constant -1.000000e+30 : f32
        %56 = vector.broadcast %cst_23 : f32 to vector<1x128xf32>
        %c0_24 = arith.constant 0 : index
        %c0_25 = arith.constant 0 : index
        %57 = vector.load %arg9[%c0_24, %c0_25] : memref<1x128xf32, #tpu.memory_space<vmem>>, vector<1x128xf32>
        tpu.vector_store %arg9[%c0_24, %c0_25], %56 {strides = array<i32>} : memref<1x128xf32, #tpu.memory_space<vmem>>, vector<1x128xf32>,
        %cst_26 = arith.constant 0.000000e+00 : f32
        %58 = vector.broadcast %cst_26 : f32 to vector<1x128xf32>
        %c0_27 = arith.constant 0 : index
        %c0_28 = arith.constant 0 : index
        %59 = vector.load %arg10[%c0_27, %c0_28] : memref<1x128xf32, #tpu.memory_space<vmem>>, vector<1x128xf32>
        tpu.vector_store %arg10[%c0_27, %c0_28], %58 {strides = array<i32>} : memref<1x128xf32, #tpu.memory_space<vmem>>, vector<1x128xf32>,
      } else {
      }
      %c0 = arith.constant 0 : index
      %c0_4 = arith.constant 0 : index
      %11 = vector.load %arg2[%c0, %c0_4] : memref<16x48xf32, #tpu.memory_space<vmem>>, vector<16x48xf32>
      %c0_5 = arith.constant 0 : index
      %c0_6 = arith.constant 0 : index
      %12 = vector.load %arg3[%c0_5, %c0_6] : memref<48x192xf32, #tpu.memory_space<vmem>>, vector<48x192xf32>
      %cst = arith.constant dense<0.000000e+00> : vector<16x192xf32>
      %13 = tpu.matmul %11, %12, %cst {dimension_numbers = #tpu.dot_dimension_numbers<[1], [0], [0], [1], [0, 0, 1, 1], [], []>} : vector<16x48xf32>, vector<48x192xf32>, vector<16x192xf32> -> vector<16x192xf32>
      %c0_7 = arith.constant 0 : index
      %c0_8 = arith.constant 0 : index
      %14 = vector.load %arg4[%c0_7, %c0_8] : memref<1x192xf32, #tpu.memory_space<vmem>>, vector<1x192xf32>
      %15 = vector.broadcast %14 : vector<1x192xf32> to vector<16x192xf32>
      %16 = arith.addf %13, %15 : vector<16x192xf32>
      %17 = vector.extract_strided_slice %16 {offsets = [0, 0], sizes = [16, 64], strides = [1, 1]} : vector<16x192xf32> to vector<16x64xf32>
      %18 = vector.extract_strided_slice %16 {offsets = [0, 64], sizes = [16, 64], strides = [1, 1]} : vector<16x192xf32> to vector<16x64xf32>
      %19 = vector.extract_strided_slice %16 {offsets = [0, 128], sizes = [16, 64], strides = [1, 1]} : vector<16x192xf32> to vector<16x64xf32>
      %20 = arith.mulf %17, %18 : vector<16x64xf32>
      %cst_9 = arith.constant dense<0.000000e+00> : vector<16xf32>
      %21 = vector.multi_reduction <add>, %20, %cst_9 [1] : vector<16x64xf32> to vector<16xf32>
      %22 = vector.shape_cast %21 : vector<16xf32> to vector<16x1xf32>
      %c16_i32_10 = arith.constant 16 : i32
      %23 = arith.muli %arg1, %c16_i32_10 : i32
      %24 = tpu.iota {dimensions = array<i32: 0>} : vector<16x1xi32>
      %25 = vector.broadcast %23 : i32 to vector<16x1xi32>
      %26 = arith.addi %25, %24 : vector<16x1xi32>
      %c8_i32 = arith.constant 8 : i32
      %27 = vector.broadcast %c8_i32 : i32 to vector<16x1xi32>
      %28 = arith.cmpi slt, %26, %27 : vector<16x1xi32>
      %cst_11 = arith.constant -1.000000e+30 : f32
      %29 = vector.broadcast %cst_11 : f32 to vector<16x1xf32>
      %30 = arith.select %28, %22, %29 : vector<16x1xi1>, vector<16x1xf32>
      %31 = arith.index_cast %1 : i32 to index
      %c0_12 = arith.constant 0 : index
      %32 = vector.load %arg8[%31, %c0_12] : memref<16x128xf32, #tpu.memory_space<vmem>>, vector<16x64xf32>
      tpu.vector_store %arg8[%31, %c0_12], %19 {strides = array<i32>} : memref<16x128xf32, #tpu.memory_space<vmem>>, vector<16x64xf32>,
      %33 = vector.shape_cast %30 : vector<16x1xf32> to vector<16x1xf32>
      %34 = vector.broadcast %33 : vector<16x1xf32> to vector<16x64xf32>
      %35 = arith.index_cast %1 : i32 to index
      %c64 = arith.constant 64 : index
      %36 = vector.load %arg8[%35, %c64] : memref<16x128xf32, #tpu.memory_space<vmem>>, vector<16x64xf32>
      tpu.vector_store %arg8[%35, %c64], %34 {strides = array<i32>} : memref<16x128xf32, #tpu.memory_space<vmem>>, vector<16x64xf32>,
      %c0_13 = arith.constant 0 : index
      %c0_14 = arith.constant 0 : index
      %37 = vector.load %arg9[%c0_13, %c0_14] : memref<1x128xf32, #tpu.memory_space<vmem>>, vector<1x128xf32>
      %cst_15 = arith.constant dense<0xFF800000> : vector<1xf32>
      %38 = vector.multi_reduction <maximumf>, %30, %cst_15 [0] : vector<16x1xf32> to vector<1xf32>
      %39 = vector.shape_cast %38 : vector<1xf32> to vector<1x1xf32>
      %40 = vector.broadcast %39 : vector<1x1xf32> to vector<1x128xf32>
      %41 = arith.maximumf %37, %40 : vector<1x128xf32>
      %c0_16 = arith.constant 0 : index
      %c0_17 = arith.constant 0 : index
      %42 = vector.load %arg10[%c0_16, %c0_17] : memref<1x128xf32, #tpu.memory_space<vmem>>, vector<1x128xf32>
      %43 = arith.subf %37, %41 : vector<1x128xf32>
      %44 = math.exp %43 : vector<1x128xf32>
      %45 = arith.mulf %42, %44 : vector<1x128xf32>
      %46 = vector.extract_strided_slice %41 {offsets = [0, 0], sizes = [1, 1], strides = [1, 1]} : vector<1x128xf32> to vector<1x1xf32>
      %47 = vector.broadcast %46 : vector<1x1xf32> to vector<16x1xf32>
      %48 = arith.subf %30, %47 : vector<16x1xf32>
      %49 = math.exp %48 : vector<16x1xf32>
      %cst_18 = arith.constant dense<0.000000e+00> : vector<1xf32>
      %50 = vector.multi_reduction <add>, %49, %cst_18 [0] : vector<16x1xf32> to vector<1xf32>
      %51 = vector.shape_cast %50 : vector<1xf32> to vector<1x1xf32>
      %52 = vector.broadcast %51 : vector<1x1xf32> to vector<1x128xf32>
      %53 = arith.addf %45, %52 : vector<1x128xf32>
      %c0_19 = arith.constant 0 : index
      %c0_20 = arith.constant 0 : index
      %54 = vector.load %arg10[%c0_19, %c0_20] : memref<1x128xf32, #tpu.memory_space<vmem>>, vector<1x128xf32>
      tpu.vector_store %arg10[%c0_19, %c0_20], %53 {strides = array<i32>} : memref<1x128xf32, #tpu.memory_space<vmem>>, vector<1x128xf32>,
      %c0_21 = arith.constant 0 : index
      %c0_22 = arith.constant 0 : index
      %55 = vector.load %arg9[%c0_21, %c0_22] : memref<1x128xf32, #tpu.memory_space<vmem>>, vector<1x128xf32>
      tpu.vector_store %arg9[%c0_21, %c0_22], %41 {strides = array<i32>} : memref<1x128xf32, #tpu.memory_space<vmem>>, vector<1x128xf32>,
    } else {
    }
    %c1_i32 = arith.constant 1 : i32
    %5 = arith.cmpi eq, %arg0, %c1_i32 : i32
    %6 = arith.extui %5 : i1 to i32
    %c0_i32_1 = arith.constant 0 : i32
    %7 = arith.cmpi ne, %6, %c0_i32_1 : i32
    scf.if %7 {
      %c0 = arith.constant 0 : index
      %c0_2 = arith.constant 0 : index
      %8 = vector.load %arg9[%c0, %c0_2] : memref<1x128xf32, #tpu.memory_space<vmem>>, vector<1x128xf32>
      %9 = vector.extract_strided_slice %8 {offsets = [0, 0], sizes = [1, 1], strides = [1, 1]} : vector<1x128xf32> to vector<1x1xf32>
      %c0_3 = arith.constant 0 : index
      %c0_4 = arith.constant 0 : index
      %10 = vector.load %arg10[%c0_3, %c0_4] : memref<1x128xf32, #tpu.memory_space<vmem>>, vector<1x128xf32>
      %11 = vector.extract_strided_slice %10 {offsets = [0, 0], sizes = [1, 1], strides = [1, 1]} : vector<1x128xf32> to vector<1x1xf32>
      %cst = arith.constant 1.000000e+00 : f32
      %12 = vector.broadcast %cst : f32 to vector<1x1xf32>
      %13 = arith.divf %12, %11 : vector<1x1xf32>
      %14 = arith.index_cast %1 : i32 to index
      %c0_5 = arith.constant 0 : index
      %15 = vector.load %arg8[%14, %c0_5] : memref<16x128xf32, #tpu.memory_space<vmem>>, vector<16x128xf32>
      %16 = vector.extract_strided_slice %15 {offsets = [0, 0], sizes = [16, 64], strides = [1, 1]} : vector<16x128xf32> to vector<16x64xf32>
      %17 = vector.extract_strided_slice %15 {offsets = [0, 64], sizes = [16, 1], strides = [1, 1]} : vector<16x128xf32> to vector<16x1xf32>
      %18 = vector.broadcast %9 : vector<1x1xf32> to vector<16x1xf32>
      %19 = arith.subf %17, %18 : vector<16x1xf32>
      %20 = math.exp %19 : vector<16x1xf32>
      %21 = vector.broadcast %13 : vector<1x1xf32> to vector<16x1xf32>
      %22 = arith.mulf %20, %21 : vector<16x1xf32>
      %23 = vector.broadcast %22 : vector<16x1xf32> to vector<16x64xf32>
      %24 = arith.mulf %23, %16 : vector<16x64xf32>
      %c0_6 = arith.constant 0 : index
      %c0_7 = arith.constant 0 : index
      %25 = vector.load %arg5[%c0_6, %c0_7] : memref<64x128xf32, #tpu.memory_space<vmem>>, vector<64x128xf32>
      %cst_8 = arith.constant dense<0.000000e+00> : vector<16x128xf32>
      %26 = tpu.matmul %24, %25, %cst_8 {dimension_numbers = #tpu.dot_dimension_numbers<[1], [0], [0], [1], [0, 0, 1, 1], [], []>} : vector<16x64xf32>, vector<64x128xf32>, vector<16x128xf32> -> vector<16x128xf32>
      %c0_9 = arith.constant 0 : index
      %c0_10 = arith.constant 0 : index
      %27 = vector.load %arg6[%c0_9, %c0_10] : memref<1x128xf32, #tpu.memory_space<vmem>>, vector<1x128xf32>
      %28 = vector.broadcast %27 : vector<1x128xf32> to vector<16x128xf32>
      %29 = arith.addf %26, %28 : vector<16x128xf32>
      %c0_11 = arith.constant 0 : index
      %c0_12 = arith.constant 0 : index
      %30 = vector.load %arg7[%c0_11, %c0_12] : memref<16x128xf32, #tpu.memory_space<vmem>>, vector<16x128xf32>
      tpu.vector_store %arg7[%c0_11, %c0_12], %29 {strides = array<i32>} : memref<16x128xf32, #tpu.memory_space<vmem>>, vector<16x128xf32>,
    } else {
    }
    return
  }
  func.func @transform_0(%arg0: i32, %arg1: i32) -> (i32, i32) {
    %c0_i32 = arith.constant 0 : i32
    %0 = arith.subi %c0_i32, %arg1 : i32
    %1 = arith.muli %arg0, %0 : i32
    %2 = arith.addi %arg1, %1 : i32
    %c0_i32_0 = arith.constant 0 : i32
    %c0_i32_1 = arith.constant 0 : i32
    return %2, %c0_i32_0 : i32, i32
  }
  func.func @transform_1(%arg0: i32, %arg1: i32) -> (i32, i32) {
    %c0_i32 = arith.constant 0 : i32
    %c0_i32_0 = arith.constant 0 : i32
    %c0_i32_1 = arith.constant 0 : i32
    return %c0_i32, %c0_i32_0 : i32, i32
  }
  func.func @transform_2(%arg0: i32, %arg1: i32) -> (i32, i32) {
    %c0_i32 = arith.constant 0 : i32
    %c0_i32_0 = arith.constant 0 : i32
    %c0_i32_1 = arith.constant 0 : i32
    return %c0_i32, %c0_i32_0 : i32, i32
  }
  func.func @transform_3(%arg0: i32, %arg1: i32) -> (i32, i32) {
    %c0_i32 = arith.constant 0 : i32
    %c0_i32_0 = arith.constant 0 : i32
    %c0_i32_1 = arith.constant 0 : i32
    return %c0_i32, %c0_i32_0 : i32, i32
  }
  func.func @transform_4(%arg0: i32, %arg1: i32) -> (i32, i32) {
    %c0_i32 = arith.constant 0 : i32
    %c0_i32_0 = arith.constant 0 : i32
    %c0_i32_1 = arith.constant 0 : i32
    return %c0_i32, %c0_i32_0 : i32, i32
  }
  func.func @transform_5(%arg0: i32, %arg1: i32) -> (i32, i32) {
    %0 = arith.muli %arg0, %arg1 : i32
    %c0_i32 = arith.constant 0 : i32
    %c0_i32_0 = arith.constant 0 : i32
    return %0, %c0_i32 : i32, i32
  }
}

</mosaic_0001>

<bundles_post_ra>
// kernel: tpu_custom_call.1
= control target key start
LH: loop header
LB: loop body
LE: loop exit
PB: predicated region body
PF: predicated region fallthrough
CT: control target
= control target key end

     0   :  { %10 = vsyncpa [#allocation6], 0  ;;  %s1309_s0 = inlined_call_operand.hbm [shape: f32[16,48], index: 0, kind: input, shape index: {}]   ;;  %s1310_s1 = inlined_call_operand.hbm [shape: f32[48,192], index: 1, kind: input, shape index: {}]   ;;  %s1311_s2 = inlined_call_operand.vmem [shape: f32[1,192], index: 2, kind: input, shape index: {}]   ;;  %s1312_s3 = inlined_call_operand.hbm [shape: f32[64,128], index: 3, kind: input, shape index: {}]   ;;  %s1313_s4 = inlined_call_operand.vmem [shape: f32[1,128], index: 4, kind: input, shape index: {}]   ;;  %s1314_s5 = inlined_call_operand.hbm [shape: f32[16,128], index: 5, kind: output, shape index: {}]  }
   0x1   :  { %12 = vsyncpa [#allocation6 + $0x1], 0 }
   0x2   :  { %13 = vsyncpa [#allocation9], 0 }
   0x3   :  { %14 = vsyncpa [#allocation7], 0 }
   0x4   :  { %16 = vsyncpa [#allocation7 + $0x1], 0  ;;  %s1140_s18 = smov 0   ;;  %s1142_s19 = smov 0  }
   0x5   :  { %s1144_s20 = smov 0  }
   0x6 LB: > { %s765_s21 = sadd.s32 4294967295, %s1092_s20   ;;  %s766_s22 = sadd.s32 4294967294, %s1092_s20   ;;  %s1092_s20 = sphi %s1144_s20, %s22_s20   ;;  %s1088_s19 = sphi %s1142_s19, %s1327_s19   ;;  %s1084_s18 = sphi %s1140_s18, %s1326_s18  }
   0x7   : > { %s34_s23 = sadd.s32 1, %s1088_s19  ;;  %p767_p0 = scmp.ge.s32.totalorder %s1092_s20, 1 }
   0x8   : > { %p36_p1 = scmp.ge.s32.totalorder %s34_s23, 2  ;;  %p183_p2 = scmp.lt.s32.totalorder %s1092_s20, 3 }
   0x9   : > { %p1162_p3 = scmp.eq.s32.totalorder %s765_s21, 0  ;;  %s1094_s26 = smov [#allocation8]  }
   0xa   : > { %s1329_s23 = smov (%p36_p1, %s34_s23), 0  ;;  %p1168_p4 = pnand %p767_p0, %p183_p2 }
   0xb   : > { %s1318_s24 = scalar_select %p1162_p3, 1, 0 }
   0xc   : > { %s1319_s25 = scalar_select %p1168_p4, 1, 0 }
   0xd   : > { %s195_s27 = sshll.u32 %s1094_s26, 4  ;;  %p867_p5 = pneg %p1168_p4  ;;  %s196_s27 = int_to_ptr.vmem [resolvable:$true] %s195_s27 }
   0xe   : > { %s1095_s29 = smov [#allocation10]   ;;  %s948_s8 = scalar_lea.hbm %s1310_s1, 1536 }
   0xf   : > { %p1177_p7 = pnand %p1162_p3, %p867_p5  ;;  %s211_s30 = sshll.u32 %s1095_s29, 4  ;;  %s212_s30 = int_to_ptr.vmem [resolvable:$true] %s211_s30 }
  0x10   : > { %p949_p8 = scmp.ne.s32.totalorder %s1310_s1, %s948_s8  ;;  %p955_p12 = scmp.lt.u32.totalorder %s948_s8, %s1310_s1 }
  0x11   : > { %p950_p9 = pneg %p1177_p7 }
  0x13   : > { %p951_p10 = pnand %p950_p9, %p949_p8 }
  0x15   : > { %p952_p11 = pneg %p951_p10 }
  0x17   : > { %p957_p13 = pnand %p955_p12, %p952_p11 }
  0x19   : > { %960 = shalt.err (!%p957_p13)
}
  0x1a   : > { %s961_s13 = scalar_lea.vmem %s196_s27, 1536  ;;  %p969_p5 = scmp.lt.s32.totalorder %s196_s27, %s196_s27 }
  0x1b   : > { %p962_p0 = scmp.ne.s32.totalorder %s196_s27, %s961_s13  ;;  %p970_p6 = scmp.lt.s32.totalorder %s961_s13, %s961_s13 }
  0x1d   : > { %p964_p1 = pnand %p962_p0, %p950_p9  ;;  %p971_p3 = por %p970_p6, %p969_p5 }
  0x1f   : > { %p965_p2 = pneg %p964_p1 }
  0x21   : > { %p972_p4 = pnand %p971_p3, %p965_p2 }
  0x23   : > { %975 = shalt.err (!%p972_p4)
}
  0x24   : > { %s1096_s14 = smov 256   ;;  %s1097_s15 = smov 16  }
  0x25   : > { %870 = dma.hbm_to_vmem [thread:$0]  (!%p1177_p7), %s1310_s1, 1536, %s196_s27, [#allocation9], %s1096_s14, %s1096_s14, %s1097_s15  }
  0x26   : > { %s976_s6 = scalar_lea.hbm %s1312_s3, 1024 }
  0x27   : > { %p977_p6 = scmp.ne.s32.totalorder %s1312_s3, %s976_s6  ;;  %p983_p8 = scmp.lt.u32.totalorder %s976_s6, %s1312_s3 }
  0x29   : > { %p979_p3 = pnand %p977_p6, %p950_p9 }
  0x2b   : > { %p980_p4 = pneg %p979_p3 }
  0x2d   : > { %p985_p10 = pnand %p983_p8, %p980_p4 }
  0x2f   : > { %988 = shalt.err (!%p985_p10)
}
  0x30   : > { %s989_s27 = scalar_lea.vmem %s212_s30, 1024  ;;  %p997_p0 = scmp.lt.s32.totalorder %s212_s30, %s212_s30 }
  0x31   : > { %p990_p11 = scmp.ne.s32.totalorder %s212_s30, %s989_s27  ;;  %p998_p1 = scmp.lt.s32.totalorder %s989_s27, %s989_s27 }
  0x33   : > { %p992_p12 = pnand %p990_p11, %p950_p9  ;;  %p999_p2 = por %p998_p1, %p997_p0 }
  0x35   : > { %p993_p13 = pneg %p992_p12 }
  0x37   : > { %p1000_p5 = pnand %p999_p2, %p993_p13 }
  0x39   : > { %1003 = shalt.err (!%p1000_p5)
}
  0x3a   : > { %s1098_s11 = smov 128   ;;  %s1099_s12 = smov 8  }
  0x3b   : > { %873 = dma.hbm_to_vmem [thread:$0]  (!%p1177_p7), %s1312_s3, 1024, %s212_s30, [#allocation9], %s1098_s11, %s1098_s11, %s1099_s12  }
  0x3c   : > { %p884_p9 = scmp.lt.s32.totalorder %s1092_s20, 2  ;;  %p885_p6 = scmp.eq.s32.totalorder %s1092_s20, 0 }
  0x3d   : > { %s1100_s15 = smov [#allocation5]   ;;  %s1004_s28 = scalar_lea.hbm %s1309_s0, 256 }
  0x3e   : > { %s242_s16 = sshll.u32 %s1100_s15, 4  ;;  %p1228_p3 = pnand %p885_p6, %p884_p9  ;;  %s243_s16 = int_to_ptr.vmem [resolvable:$true] %s242_s16 }
  0x3f   : > { %p1005_p4 = scmp.ne.s32.totalorder %s1309_s0, %s1004_s28  ;;  %p1011_p11 = scmp.lt.u32.totalorder %s1004_s28, %s1309_s0 }
  0x40   : > { %p1006_p7 = pneg %p1228_p3 }
  0x42   : > { %p1007_p8 = pnand %p1006_p7, %p1005_p4 }
  0x44   : > { %p1008_p10 = pneg %p1007_p8 }
  0x46   : > { %p1013_p12 = pnand %p1011_p11, %p1008_p10 }
  0x48   : > { %1016 = shalt.err (!%p1013_p12)
}
  0x49   : > { %s1017_s9 = scalar_lea.vmem %s243_s16, 256  ;;  %s1024_s10 = scalar_lea.vmem %s243_s16, 512 }
  0x4a   : > { %p1018_p13 = scmp.ne.s32.totalorder %s243_s16, %s1017_s9  ;;  %p1025_p2 = scmp.lt.s32.totalorder %s243_s16, %s243_s16 }
  0x4b   : > { %p1026_p5 = scmp.lt.s32.totalorder %s1024_s10, %s1017_s9 }
  0x4c   : > { %p1020_p0 = pnand %p1018_p13, %p1006_p7 }
  0x4d   : > { %p1027_p9 = por %p1026_p5, %p1025_p2 }
  0x4e   : > { %p1021_p1 = pneg %p1020_p0 }
  0x50   : > { %p1028_p6 = pnand %p1027_p9, %p1021_p1 }
  0x52   : > { %1031 = shalt.err (!%p1028_p6)
}
  0x53   : > { %877 = dma.hbm_to_vmem [thread:$0]  (!%p1228_p3), %s1309_s0, 256, %s243_s16, [#allocation6], %s1098_s11, %s1098_s11, %s1099_s12  }
  0x54   : > { %p1322_p4 = scmp.ne.s32.totalorder %s1319_s25, 0 }
  0x55   : > { %p1323_p7 = scmp.ne.s32.totalorder (!%p1322_p4), %s1318_s24, 0 }
  0x56   : > { %254 = sbr.rel (%p1322_p4) target bundleno = 1277 (0x4fd), region = 40 }
  0x5d   : > { %1071 = dma.done.wait (%p1323_p7), [#allocation6], 256  }
  0x5e   : > { %1073 = vsyncadd (%p1323_p7), [#allocation6], 4294967040 }
  0x5f   : > { %1075 = dma.done.wait (%p1323_p7), [#allocation9], 2560  }
  0x60   : > { %1077 = vsyncadd (%p1323_p7), [#allocation9], 4294964736  ;;  %p776_p8 = scmp.ne.s32.totalorder %s1084_s18, 0 }
  0x61   : > { %v315_v0 = vld [vmem:[#allocation8 + $0x8] sm:$0xff] (!%p776_p8)  ;;  %v317_v1 = vld [vmem:[#allocation8 + $0x18] sm:$0xff] (!%p776_p8)  ;;  %v314_v2 = vld [vmem:[#allocation8] sm:$0xff] (!%p776_p8)  ;;  %v1101_v7 = vmov (!%p776_p8), 0.0   ;;  %vm338_vm0 = vcmask (!%p776_p8), 392192   ;;  %v328_v20 = vlaneseq (!%p776_p8)  ;;  %vm432_vm1 = vcmask (!%p776_p8), 523264  }
  0x62   : > { %305 = sbr.rel (%p776_p8) target bundleno = 766 (0x2fe), region = 56  ;;  %v817_v3 = vpack.c.bf16 (!%p776_p8), %v317_v1, %v315_v0  ;;  %v316_v4 = vld [vmem:[#allocation8 + $0x10] sm:$0xff] (!%p776_p8)  ;;  %v319_v5 = vld [vmem:[#allocation8 + $0x28] sm:$0xff] (!%p776_p8)  ;;  %v321_v6 = vld [vmem:[#allocation8 + $0x38] sm:$0xff] (!%p776_p8)  ;;  %311 = vst [vmem:[#allocation4] sm:$0x1] (!%p776_p8), %v1101_v7  ;;  %409 = vmatprep.mubr.f32.mxu0 (!%p776_p8), %v1101_v7  ;;  %415 = vmatprep.mubr.f32.mxu1 (!%p776_p8), %v1101_v7 }
  0x63   : > { %v819_v8 = vpack.c.bf16 (!%p776_p8), %v316_v4, %v314_v2  ;;  %v821_v9 = vpack.c.bf16 (!%p776_p8), %v321_v6, %v319_v5  ;;  %v318_v10 = vld [vmem:[#allocation8 + $0x20] sm:$0xff] (!%p776_p8)  ;;  %v320_v11 = vld [vmem:[#allocation8 + $0x30] sm:$0xff] (!%p776_p8)  ;;  %v323_v12 = vld [vmem:[#allocation8 + $0x48] sm:$0xff] (!%p776_p8)  ;;  %v329_v21 = vshrl.u32 (!%p776_p8), %v328_v20, 7  ;;  %s1102_s11 = smov (!%p776_p8), 64   ;;  %v1104_v36 = vmov (!%p776_p8), 0  }
  0x64   : > { %818 = vmatprep.subr.bf16.mxu0 (!%p776_p8), %v817_v3  ;;  %v325_v13 = vld [vmem:[#allocation8 + $0x58] sm:$0xff] (!%p776_p8)  ;;  %845 = vmatprep.subr.bf16.mxu1 (!%p776_p8), %v817_v3  ;;  %v823_v14 = vpack.c.bf16 (!%p776_p8), %v320_v11, %v318_v10  ;;  %v322_v16 = vld [vmem:[#allocation8 + $0x40] sm:$0xff] (!%p776_p8)  ;;  %v324_v17 = vld [vmem:[#allocation8 + $0x50] sm:$0xff] (!%p776_p8)  ;;  %v1103_v35 = vmov (!%p776_p8), -1e+30   ;;  %vm452_vm2 = vcmask (!%p776_p8), 1048064  }
  0x65   : > { %820 = vmatpush1.bf16.msra.mxu0 (!%p776_p8), %v819_v8  ;;  %848 = vmatpush1.bf16.msra.mxu1 (!%p776_p8), %v819_v8  ;;  %v825_v15 = vpack.c.bf16 (!%p776_p8), %v325_v13, %v323_v12  ;;  %v827_v18 = vpack.c.bf16 (!%p776_p8), %v324_v17, %v322_v16  ;;  %v312_v19 = vld [vmem:[#allocation5] sm:$0xff] (!%p776_p8)  ;;  %v330_v22 = vsub.s32 (!%p776_p8), 0, %v329_v21  ;;  %v313_v23 = vld [vmem:[#allocation5 + $0x8] sm:$0xff] (!%p776_p8)  ;;  %v334_v25 = vsub.s32 (!%p776_p8), 1, %v329_v21  ;;  %310 = vst [vmem:[#allocation3] sm:$0x1] (!%p776_p8), %v1103_v35 }
  0x66   : > { %822 = vmatprep.subr.bf16.mxu0 (!%p776_p8), %v821_v9  ;;  %846 = vmatprep.subr.bf16.mxu1 (!%p776_p8), %v821_v9  ;;  %v326_v24 = vld [vmem:[%s1311_s2] sm:$0x3] (!%p776_p8)  ;;  %vm481_vm3 = vcmask (!%p776_p8), 7168  }
  0x67   : > { %v331_v26 = vrot.slane (!%p776_p8), %v326_v24, %v330_v22  ;;  %v335_v27 = vrot.slane (!%p776_p8), %v326_v24, %v334_v25  ;;  %932 = vset.pattern.permute.xlu1 (!%p776_p8), %v1104_v36  ;;  %933 = vset.pattern.permute.xlu0 (!%p776_p8), %v1104_v36 }
  0x69   : > { %824 = vmatpush1.bf16.msra.mxu0 %v823_v14  ;;  %849 = vmatpush1.bf16.msra.mxu1 %v823_v14  ;;  %v464_v5 = vld [vmem:[#allocation4] sm:$0x1] }
  0x6a   : > { %826 = vmatprep.subr.bf16.mxu0 %v825_v15  ;;  %847 = vmatprep.subr.bf16.mxu1 %v825_v15 }
  0x6c   : > { %v455_v47 = vld [vmem:[#allocation3] sm:$0x1] }
  0x6d   : > { %828 = vmatpush1.bf16.msra.mxu0 %v827_v18  ;;  %850 = vmatpush1.bf16.msra.mxu1 %v827_v18 }
  0x70   : > { %777 = vmatmul.mubr.msk.f32.vlgmr.msra.gmra.mrb[0].mxu0 %vm338_vm0, %v312_v19  ;;  %778 = vmatmul.mubr.msk.f32.vlgmr.msra.gmra.mrb[0].mxu1 %vm338_vm0, %v313_v23 }
 0x143   : > { %v411_v28 = vpop.f32.mrb[0].mxu0  ;;  %v417_v37 = vpop.f32.mrb[0].mxu1 }
 0x144   : > { %v412_v29 = vadd.f32 %v411_v28, %v331_v26  ;;  %v413_v30 = vpop.f32.mrb[1].mxu0  ;;  %v419_v38 = vpop.f32.mrb[1].mxu1 }
 0x145   : > { %v414_v31 = vadd.f32 %v413_v30, %v335_v27  ;;  %v420_v39 = vadd.f32 %v419_v38, %v335_v27 }
 0x146   : > { %424 = vrot.lane.b32.xlu0 %v412_v29, %s1102_s11 }
 0x147   : > { %450 = vst.msk [vmem:[#allocation2] sm:$0xff] %vm432_vm1, %v414_v31  ;;  %451 = vst.msk [vmem:[#allocation2 + $0x8] sm:$0xff] %vm432_vm1, %v420_v39 }
 0x148   : > { %454 = vst.msk [vmem:[#allocation2 + $0x8] sm:$0xff] %vm452_vm2, %v1103_v35 }
 0x1b8   : > { %v425_v32 = vpop.permute.xlu0 %424 }
 0x1b9   : > { %v430_v33 = vmul.f32 %v425_v32, %v412_v29 }
 0x1bb   : > { %v433_v34 = vsel %vm432_vm1, %v430_v33, 0.0 }
 0x1bc   : > { %434 = vadd.xlane.f32.xlu0 %v433_v34 }
 0x249   : > { %v435_v40 = vpop.xlane.xlu0 %434 }
 0x24a   : > { %453 = vst.msk [vmem:[#allocation2] sm:$0xff] %vm452_vm2, %v435_v40  ;;  %v456_v41 = vmax.f32 %v435_v40, -1e+30 }
 0x24c   : > { %v457_v42 = vrot.slane %v456_v41, 4 }
 0x24e   : > { %v458_v43 = vmax.f32 %v456_v41, %v457_v42 }
 0x250   : > { %v459_v44 = vrot.slane %v458_v43, 2 }
 0x252   : > { %v460_v45 = vmax.f32 %v458_v43, %v459_v44 }
 0x254   : > { %v461_v46 = vrot.slane %v460_v45, 1 }
 0x256   : > { %v462_v48 = vmax.f32 %v460_v45, %v461_v46 }
 0x258   : > { %v463_v49 = vmax.f32 %v455_v47, %v462_v48 }
 0x25a   : > { %v465_v50 = vsub.f32 %v455_v47, %v463_v49  ;;  %v473_v51 = vrot.slane %v463_v49, %v330_v22  ;;  %498 = vst [vmem:[#allocation3] sm:$0x1] %v463_v49 }
 0x25c   : > { %v475_v52 = vsub.f32 %v435_v40, %v473_v51  ;;  %v476_v53 = vsub.f32 -1e+30, %v473_v51  ;;  %v466_v3 = vmul.f32 1.442695, %v465_v50 }
 0x25e   : > { %v477_v54 = vmul.f32 1.442695, %v475_v52  ;;  %v479_v55 = vmul.f32 1.442695, %v476_v53 }
 0x260   : > { %934 = vpow2.f32 %v477_v54 }
 0x261   : > { %936 = vpow2.f32 %v479_v55 }
 0x262   : > { %938 = vpow2.f32 %v466_v3 }
 0x26a   : > { %v935_v56 = vpop.eup %934 }
 0x26b   : > { %v937_v57 = vpop.eup %936  ;;  %v482_v58 = vsel %vm481_vm3, %v935_v56, 0.0 }
 0x26c   : > { %v483_v59 = vsel %vm481_vm3, %v937_v57, 0.0  ;;  %v939_v4 = vpop.eup %938 }
 0x26d   : > { %v484_v60 = vadd.f32 %v483_v59, %v482_v58  ;;  %v468_v6 = vmul.f32 %v939_v4, %v464_v5 }
 0x26f   : > { %v485_v61 = vrot.slane %v484_v60, 4 }
 0x271   : > { %v486_v62 = vadd.f32 %v485_v61, %v484_v60 }
 0x273   : > { %v487_v63 = vrot.slane %v486_v62, 2 }
 0x275   : > { %v488_v0 = vadd.f32 %v487_v63, %v486_v62 }
 0x277   : > { %v489_v1 = vrot.slane %v488_v0, 1 }
 0x279   : > { %v490_v2 = vadd.f32 %v489_v1, %v488_v0 }
 0x27b   : > { %493 = vperm.xlu1 %932, %v490_v2  }
 0x2fa   : > { %v494_v7 = vpop.permute.xlu1 %493 }
 0x2fb   : > { %v496_v8 = vadd.f32 %v494_v7, %v468_v6 }
 0x2fd   : > { %497 = vst [vmem:[#allocation4] sm:$0x1] %v496_v8 }
 0x2fe PF: > { %p779_p3 = scmp.ne.s32.totalorder %s1084_s18, 1 }
 0x2ff   : > { %v525_v11 = vlaneseq (!%p779_p3)  ;;  %s1105_s12 = smov (!%p779_p3), 64   ;;  %v1106_v13 = vmov (!%p779_p3), 64   ;;  %v546_v15 = vld [vmem:[#allocation10] sm:$0xff] (!%p779_p3)  ;;  %v547_v16 = vld [vmem:[#allocation10 + $0x8] sm:$0xff] (!%p779_p3)  ;;  %v548_v17 = vld [vmem:[#allocation10 + $0x10] sm:$0xff] (!%p779_p3)  ;;  %vm561_vm4 = vcmask (!%p779_p3), 523264  }
 0x300   : > { %502 = sbr.rel (%p779_p3) target bundleno = 1253 (0x4e5), region = 64  ;;  %940 = vset.pattern.permute.xlu1 (!%p779_p3), %v1106_v13  ;;  %941 = vset.pattern.permute.xlu0 (!%p779_p3), %v1106_v13  ;;  %v829_v18 = vpack.c.bf16 (!%p779_p3), %v547_v16, %v546_v15  ;;  %v549_v19 = vld [vmem:[#allocation10 + $0x18] sm:$0xff] (!%p779_p3)  ;;  %v550_v22 = vld [vmem:[#allocation10 + $0x20] sm:$0xff] (!%p779_p3)  ;;  %v551_v23 = vld [vmem:[#allocation10 + $0x28] sm:$0xff] (!%p779_p3) }
 0x301   : > { %v780_v9 = vld [vmem:[#allocation3] ss:$0 sm:$0xff] (!%p779_p3)  ;;  %v526_v12 = vshrl.u32 (!%p779_p3), %v525_v11, 7  ;;  %v833_v21 = vpack.c.bf16 (!%p779_p3), %v549_v19, %v548_v17  ;;  %v837_v25 = vpack.c.bf16 (!%p779_p3), %v551_v23, %v550_v22  ;;  %v508_v26 = vld [vmem:[#allocation2] sm:$0xff] (!%p779_p3)  ;;  %v509_v27 = vld [vmem:[#allocation2 + $0x8] sm:$0xff] (!%p779_p3) }
 0x302   : > { %515 = vrot.lane.b32.xlu0 (!%p779_p3), %v780_v9, %s1105_s12  ;;  %830 = vmatprep.subr.bf16.mxu0 (!%p779_p3), %v829_v18  ;;  %v552_v37 = vld [vmem:[#allocation10 + $0x30] sm:$0xff] (!%p779_p3)  ;;  %v553_v38 = vld [vmem:[#allocation10 + $0x38] sm:$0xff] (!%p779_p3)  ;;  %v781_v45 = vld [vmem:[%s1313_s4] ss:$0 sm:$0xff] (!%p779_p3) }
 0x303   : > { %v527_v14 = vsub.s32 (!%p779_p3), 0, %v526_v12  ;;  %832 = vmatpush3.bf16.msra.mxu0 (!%p779_p3), %v829_v18  ;;  %v841_v39 = vpack.c.bf16 (!%p779_p3), %v553_v38, %v552_v37 }
 0x304   : > { %v504_v10 = vld [vmem:[#allocation4] sm:$0x1] (!%p779_p3)  ;;  %834 = vmatprep.subr.bf16.mxu0 (!%p779_p3), %v833_v21 }
 0x305   : > { %942 = vrcp.f32 (!%p779_p3), %v504_v10 }
 0x307   : > { %836 = vmatpush3.bf16.msra.mxu0 %v833_v21 }
 0x308   : > { %838 = vmatprep.subr.bf16.mxu0 %v837_v25 }
 0x30b   : > { %840 = vmatpush3.bf16.msra.mxu0 %v837_v25 }
 0x30c   : > { %842 = vmatprep.subr.bf16.mxu0 %v841_v39 }
 0x30f   : > { %v943_v20 = vpop.eup %942  ;;  %844 = vmatpush3.bf16.msra.mxu0 %v841_v39 }
 0x310   : > { %v528_v24 = vrot.slane %v943_v20, %v527_v14 }
 0x312   : > { %529 = vrot.lane.b32.xlu0 %v528_v24, %s1105_s12 }
 0x374   : > { %v516_v28 = vpop.permute.xlu0 %515 }
 0x375   : > { %v518_v29 = vsub.f32 %v508_v26, %v516_v28  ;;  %v519_v30 = vsub.f32 %v509_v27, %v516_v28 }
 0x377   : > { %v520_v31 = vmul.f32 1.442695, %v518_v29  ;;  %v522_v32 = vmul.f32 1.442695, %v519_v30 }
 0x379   : > { %944 = vpow2.f32 %v520_v31 }
 0x37a   : > { %946 = vpow2.f32 %v522_v32 }
 0x383   : > { %v945_v34 = vpop.eup %944 }
 0x384   : > { %v530_v33 = vpop.permute.xlu0 %529  ;;  %v947_v36 = vpop.eup %946 }
 0x385   : > { %v532_v35 = vmul.f32 %v945_v34, %v530_v33  ;;  %v533_v40 = vmul.f32 %v947_v36, %v530_v33 }
 0x387   : > { %536 = vperm.xlu1 %940, %v532_v35  }
 0x38b   : > { %541 = vperm.xlu1 %940, %v533_v40  }
 0x406   : > { %v537_v41 = vpop.permute.xlu1 %536 }
 0x407   : > { %v544_v42 = vmul.f32 %v537_v41, %v508_v26 }
 0x409   : > { %814 = vmatprep.mubr.msk.f32.mxu0 %vm561_vm4, %v544_v42 }
 0x40a   : > { %v542_v43 = vpop.permute.xlu1 %541 }
 0x40b   : > { %v545_v44 = vmul.f32 %v542_v43, %v509_v27 }
 0x40d   : > { %815 = vmatmul.mubr.msk.f32.vlgmr.msra.gmra.mrb[0].mxu0 %vm561_vm4, %v545_v44 }
 0x4e0   : > { %v816_v46 = vpop.f32.mrb[0].mxu0 }
 0x4e1   : > { %v640_v47 = vadd.f32 %v816_v46, %v781_v45  ;;  %v634_v48 = vpop.f32.mrb[1].mxu0 }
 0x4e2   : > { %v635_v49 = vadd.f32 %v781_v45, %v634_v48 }
 0x4e3   : > { %644 = vst [vmem:[#allocation11 + $0x8] sm:$0xff] %v640_v47 }
 0x4e4   : > { %643 = vst [vmem:[#allocation11] sm:$0xff] %v635_v49 }
 0x4e5 PF: > { %p1274_p10 = scmp.eq.s32.totalorder %s765_s21, 1  ;;  %s1107_s16 = smov [#allocation11]  }
 0x4e6   : > { %s660_s17 = sshll.u32 %s1107_s16, 4  ;;  %s661_s17 = int_to_ptr.vmem [resolvable:$true] %s660_s17 }
 0x4e7   : > { %s1032_s26 = scalar_lea.vmem %s661_s17, 256  ;;  %s1038_s29 = scalar_lea.vmem %s661_s17, 512 }
 0x4e8   : > { %p1033_p11 = scmp.ne.s32.totalorder %s661_s17, %s1032_s26  ;;  %p1039_p0 = scmp.lt.s32.totalorder %s661_s17, %s661_s17 }
 0x4e9   : > { %p1040_p1 = scmp.lt.s32.totalorder %s1038_s29, %s1032_s26 }
 0x4ea   : > { %p1034_p12 = pnand %p1033_p11, %p1274_p10 }
 0x4eb   : > { %p1041_p2 = por %p1040_p1, %p1039_p0 }
 0x4ec   : > { %p1035_p13 = pneg %p1034_p12 }
 0x4ee   : > { %p1042_p5 = pnand %p1041_p2, %p1035_p13 }
 0x4f0   : > { %1045 = shalt.err (!%p1042_p5)
}
 0x4f1   : > { %s1046_s6 = scalar_lea.hbm %s1314_s5, 256 }
 0x4f2   : > { %p1047_p9 = scmp.ne.s32.totalorder %s1314_s5, %s1046_s6  ;;  %p1052_p7 = scmp.lt.u32.totalorder %s1046_s6, %s1314_s5 }
 0x4f4   : > { %p1048_p6 = pnand %p1047_p9, %p1274_p10 }
 0x4f6   : > { %p1049_p4 = pneg %p1048_p6 }
 0x4f8   : > { %p1054_p8 = pnand %p1052_p7, %p1049_p4 }
 0x4fa   : > { %1057 = shalt.err (!%p1054_p8)
}
 0x4fb   : > { %s1108_s10 = smov 128   ;;  %s1109_s27 = smov 8  }
 0x4fc   : > { %864 = dma.vmem_to_hbm [thread:$0]  (%p1274_p10), %s661_s17, 256, %s1314_s5, [#allocation7], %s1108_s10, %s1108_s10, %s1109_s27  }
 0x4fd PF: > { %p891_p3 = scmp.eq.s32.totalorder %s766_s22, 1  ;;  %p1325_p11 = scmp.ge.s32.totalorder %s1092_s20, 2 }
 0x4ff   : > { %p879_p12 = pnand %p891_p3, %p1325_p11 }
 0x501   : > { %1079 = dma.done.wait (!%p879_p12), [#allocation7], 256  }
 0x502   : > { %1081 = vsyncadd (!%p879_p12), [#allocation7], 4294967040  ;;  %s22_s20 = sadd.s32 1, %s1092_s20   ;;  %s1326_s18 = smov %s1088_s19 }
 0x503   : > { %p19_p13 = scmp.ge.s32.totalorder %s22_s20, 4   ;;  %s1327_s19 = smov %s1329_s23 }
 0x505   :  { %21 = sbr.rel (!%p19_p13) target bundleno = 6 (0x6), region = 107 }
 0x50c   :  { %681 = vsyncpa [#allocation6], 1 }
 0x50d   :  { %683 = vsyncpa [#allocation6 + $0x1], 1 }
 0x50e   :  { %684 = vsyncpa [#allocation9], 1 }
 0x50f   :  { %685 = vsyncpa [#allocation7], 1 }
 0x510   :  { %687 = vsyncpa [#allocation7 + $0x1], 1 }

</bundles_post_ra>
